<compile_context>
chip_gen: v5e
topology: v5e:2x2
jax: 0.10.0
libtpu: 0.0.40
codegen_flags: <defaults>
</compile_context>

<pallas_src>
import jax
import jax.numpy as jnp
from jax.experimental import pallas as pl
from jax.experimental.pallas import tpu as pltpu


def _noise_inject_kernel(img_ref, noise_ref, w_ref, o_ref):
    # img_ref/o_ref: (1, tc, tn); noise_ref: (1, tc or 1, tn); w_ref: (1, tc, 1)
    img = img_ref[...].astype(jnp.float32)
    noi = noise_ref[...].astype(jnp.float32)
    w = w_ref[...].astype(jnp.float32)
    o_ref[...] = (img + w * noi).astype(o_ref.dtype)


def _choose_tiles(C, L, target_elems=512 * 1024):
    """Pick (tc, tn) so tc*tn*4B ~ 2 MiB per stream, honoring (8,128) rules."""
    # Lane tile: full L when it fits the budget, else a multiple of 128.
    lane_budget = max(128, (target_elems // max(min(C, 8), 1)) // 128 * 128)
    tn = L if L <= lane_budget else lane_budget
    # Channel tile under the remaining budget: either the full C or a
    # multiple of 8 (both satisfy the BlockSpec divisibility constraint).
    c_budget = max(1, target_elems // tn)
    tc = C if C <= c_budget else max(8, (c_budget // 8) * 8)
    return tc, tn


def noise_injection_forward(image, noise, weight):
    """NoiseInjection forward: image + weight * noise.

    image:  (B, C, H, W)
    noise:  broadcastable to image (typically (B, C, H, W) or (B, 1, H, W))
    weight: (1, C, 1, 1)
    """
    B, C, H, W = image.shape
    L = H * W

    # Keep noise un-materialized when only batch/channel dims broadcast.
    if (noise.ndim == 4 and noise.shape[2:] == (H, W)
            and noise.shape[0] in (1, B) and noise.shape[1] in (1, C)):
        Bn, Cn = noise.shape[0], noise.shape[1]
    else:
        # Uncommon broadcast pattern (e.g. spatial broadcast): materialize.
        noise = jnp.broadcast_to(noise, image.shape)
        Bn, Cn = B, C

    img3 = image.reshape(B, C, L)          # pure view, no transpose
    noi3 = noise.reshape(Bn, Cn, L)        # pure view, native dtype
    w3 = weight.reshape(1, C, 1)

    tc, tn = _choose_tiles(C, L)
    grid = (B, pl.cdiv(C, tc), pl.cdiv(L, tn))
    ncb = tc if Cn == C else 1             # noise channel-block size

    img_map = lambda b, c, j: (b, c, j)
    noi_map = lambda b, c, j: (b if Bn == B else 0, c if Cn == C else 0, j)
    w_map = lambda b, c, j: (0, c, 0)

    out = pl.pallas_call(
        _noise_inject_kernel,
        out_shape=jax.ShapeDtypeStruct((B, C, L), image.dtype),
        grid=grid,
        in_specs=[
            pl.BlockSpec((1, tc, tn), img_map),    # image tile
            pl.BlockSpec((1, ncb, tn), noi_map),   # noise tile (broadcast via index_map)
            pl.BlockSpec((1, tc, 1), w_map),       # per-channel weight column
        ],
        out_specs=pl.BlockSpec((1, tc, tn), img_map),
        compiler_params=pltpu.CompilerParams(
            dimension_semantics=("parallel", "parallel", "parallel")),
    )(img3, noi3, w3)

    return out.reshape(B, C, H, W)


if __name__ == "__main__":
    # Module config: NoiseInjection(channel=4); small shapes.
    B, C, H, W = 2, 4, 16, 16

    key = jax.random.PRNGKey(0)
    kx, kn, kn2, kw = jax.random.split(key, 4)

    image = jax.random.normal(kx, (B, C, H, W), dtype=jnp.float32)
    noise_full = jax.random.normal(kn, (B, C, H, W), dtype=jnp.float32)
    noise_bcast = jax.random.normal(kn2, (B, 1, H, W), dtype=jnp.float32)
    # The PyTorch module initializes weight to zeros; use a random weight so
    # the multiply path is exercised.
    weight = jax.random.normal(kw, (1, C, 1, 1), dtype=jnp.float32)

    # Full-shape noise.
    out = jax.block_until_ready(noise_injection_forward(image, noise_full, weight))
    ref = image + weight * noise_full
    assert out.shape == ref.shape == (B, C, H, W)
    assert jnp.max(jnp.abs(out - ref)) < 1e-6

    # Broadcast (B, 1, H, W) noise — read un-expanded by the kernel.
    out_b = jax.block_until_ready(noise_injection_forward(image, noise_bcast, weight))
    ref_b = image + weight * noise_bcast
    assert jnp.max(jnp.abs(out_b - ref_b)) < 1e-6

    # Module's default (zero) weight: output must equal image.
    out_zero = jax.block_until_ready(
        noise_injection_forward(image, noise_full, jnp.zeros((1, C, 1, 1), jnp.float32)))
    assert jnp.max(jnp.abs(out_zero - image)) < 1e-6

    print("KERNEL_OK")
</pallas_src>

<mosaic_0001>
module attributes {stable_mosaic.version = 11 : i64} {
  func.func @_noise_inject_kernel(%arg0: i32, %arg1: i32, %arg2: i32, %arg3: memref<1x4x256xf32, #tpu.memory_space<vmem>>, %arg4: memref<1x4x256xf32, #tpu.memory_space<vmem>>, %arg5: memref<1x4x1xf32, #tpu.memory_space<vmem>>, %arg6: memref<1x4x256xf32, #tpu.memory_space<vmem>>) attributes {dimension_semantics = [#tpu.dimension_semantics<parallel>, #tpu.dimension_semantics<parallel>, #tpu.dimension_semantics<parallel>], iteration_bounds = array<i64: 2, 1, 1>, scalar_prefetch = 0 : i64, scratch_operands = 0 : i64, tpu.core_type = #tpu.core_type<tc>, window_params = [{transform_indices = @transform_0, window_bounds = array<i64: 1, 4, 256>}, {transform_indices = @transform_1, window_bounds = array<i64: 1, 4, 256>}, {transform_indices = @transform_2, window_bounds = array<i64: 1, 4, 1>}, {transform_indices = @transform_3, window_bounds = array<i64: 1, 4, 256>}]} {
    %c0 = arith.constant 0 : index
    %c0_0 = arith.constant 0 : index
    %c0_1 = arith.constant 0 : index
    %0 = vector.load %arg3[%c0, %c0_0, %c0_1] : memref<1x4x256xf32, #tpu.memory_space<vmem>>, vector<1x4x256xf32>
    %c0_2 = arith.constant 0 : index
    %c0_3 = arith.constant 0 : index
    %c0_4 = arith.constant 0 : index
    %1 = vector.load %arg4[%c0_2, %c0_3, %c0_4] : memref<1x4x256xf32, #tpu.memory_space<vmem>>, vector<1x4x256xf32>
    %c0_5 = arith.constant 0 : index
    %c0_6 = arith.constant 0 : index
    %c0_7 = arith.constant 0 : index
    %2 = vector.load %arg5[%c0_5, %c0_6, %c0_7] : memref<1x4x1xf32, #tpu.memory_space<vmem>>, vector<1x4x1xf32>
    %3 = vector.broadcast %2 : vector<1x4x1xf32> to vector<1x4x256xf32>
    %4 = arith.mulf %3, %1 : vector<1x4x256xf32>
    %5 = arith.addf %0, %4 : vector<1x4x256xf32>
    %c0_8 = arith.constant 0 : index
    %c0_9 = arith.constant 0 : index
    %c0_10 = arith.constant 0 : index
    %6 = vector.load %arg6[%c0_8, %c0_9, %c0_10] : memref<1x4x256xf32, #tpu.memory_space<vmem>>, vector<1x4x256xf32>
    tpu.vector_store %arg6[%c0_8, %c0_9, %c0_10], %5 {strides = array<i32>} : memref<1x4x256xf32, #tpu.memory_space<vmem>>, vector<1x4x256xf32>,
    return
  }
  func.func @transform_0(%arg0: i32, %arg1: i32, %arg2: i32) -> (i32, i32, i32) {
    %c0_i32 = arith.constant 0 : i32
    return %arg0, %arg1, %arg2 : i32, i32, i32
  }
  func.func @transform_1(%arg0: i32, %arg1: i32, %arg2: i32) -> (i32, i32, i32) {
    %c0_i32 = arith.constant 0 : i32
    return %arg0, %arg1, %arg2 : i32, i32, i32
  }
  func.func @transform_2(%arg0: i32, %arg1: i32, %arg2: i32) -> (i32, i32, i32) {
    %c0_i32 = arith.constant 0 : i32
    %c0_i32_0 = arith.constant 0 : i32
    %c0_i32_1 = arith.constant 0 : i32
    return %c0_i32, %arg1, %c0_i32_0 : i32, i32, i32
  }
  func.func @transform_3(%arg0: i32, %arg1: i32, %arg2: i32) -> (i32, i32, i32) {
    %c0_i32 = arith.constant 0 : i32
    return %arg0, %arg1, %arg2 : i32, i32, i32
  }
}

</mosaic_0001>

<bundles_post_ra>
// kernel: tpu_custom_call.1
= control target key start
LH: loop header
LB: loop body
LE: loop exit
PB: predicated region body
PF: predicated region fallthrough
CT: control target
= control target key end

     0   :  { %8 = vsyncpa [#allocation3], 0  ;;  %s864_s0 = inlined_call_operand.hbm [shape: f32[2,4,256], index: 0, kind: input, shape index: {}]   ;;  %s865_s1 = inlined_call_operand.hbm [shape: f32[2,4,256], index: 1, kind: input, shape index: {}]   ;;  %s866_s2 = inlined_call_operand.vmem [shape: f32[1,4,1], index: 2, kind: input, shape index: {}]   ;;  %s867_s3 = inlined_call_operand.hbm [shape: f32[2,4,256], index: 3, kind: output, shape index: {}]  }
   0x1   :  { %10 = vsyncpa [#allocation3 + $0x1], 0 }
   0x2   :  { %11 = vsyncpa [#allocation6], 0 }
   0x3   :  { %13 = vsyncpa [#allocation6 + $0x1], 0 }
   0x4   :  { %14 = vsyncpa [#allocation4], 0 }
   0x5   :  { %16 = vsyncpa [#allocation4 + $0x1], 0  ;;  %s728_s12 = smov 0   ;;  %s730_s13 = smov 0  }
   0x6   :  { %s732_s14 = smov 0   ;;  %s734_s15 = smov 0  }
   0x7   :  { %s736_s16 = smov 0   ;;  %s738_s17 = smov 0  }
   0x8 LB: > { %s467_s18 = sadd.s32 4294967295, %s705_s17   ;;  %s468_s19 = sadd.s32 4294967294, %s705_s17   ;;  %s705_s17 = sphi %s738_s17, %s22_s17   ;;  %s701_s16 = sphi %s736_s16, %s876_s16   ;;  %s697_s15 = sphi %s734_s15, %s875_s15   ;;  %s693_s14 = sphi %s732_s14, %s874_s14   ;;  %s689_s13 = sphi %s730_s13, %s873_s13   ;;  %s685_s12 = sphi %s728_s12, %s872_s12  }
   0x9   : > { %s41_s20 = sadd.s32 1, %s701_s16  ;;  %s52_s21 = sadd.s32 1, %s693_s14 }
   0xa   : > { %p43_p0 = scmp.ge.s32.totalorder %s41_s20, 2  ;;  %p59_p1 = scmp.ne.s32.totalorder %s693_s14, %s689_s13 }
   0xb   : > { %p60_p2 = scmp.eq.s32.totalorder %s705_s17, 0  ;;  %p65_p3 = scmp.ne.s32.totalorder %s689_s13, %s685_s12 }
   0xc   : > { %s878_s20 = smov (%p43_p0, %s41_s20), 0  ;;  %p66_p5 = scmp.eq.s32.totalorder %s467_s18, 0 }
   0xd   : > { %p769_p4 = por %p60_p2, %p59_p1  ;;  %s45_s23 = ssub.s32 %s701_s16, %s878_s20 }
   0xe   : > { %p149_p6 = scmp.eq.s32.totalorder %s467_s18, 1  ;;  %p50_p7 = scmp.eq.s32.totalorder %s45_s23, 0 }
   0xf   : > { %p775_p8 = por %p66_p5, %p65_p3  ;;  %p155_p10 = scmp.eq.s32.totalorder %s468_s19, 1 }
  0x10   : > { %p779_p9 = por %p149_p6, %p59_p1  ;;  %p471_p12 = scmp.ge.s32.totalorder %s705_s17, 2 }
  0x11   : > { %s784_s26 = scalar_select %p50_p7, %s693_s14, %s52_s21  }
  0x12   : > { %p786_p11 = por %p155_p10, %p65_p3  ;;  %p507_p13 = scmp.lt.s32.totalorder %s705_s17, 2 }
  0x13   : > { %s182_s28 = sand.u32 1, %s693_s14   ;;  %s487_s30 = sshll.u32 %s701_s16, 3 }
  0x14   : > { %s472_s29 = sshll.u32 %s182_s28, 3  ;;  %s195_s6 = scalar_lea.hbm %s864_s0, %s487_s30 }
  0x15   : > { %s186_s7 = scalar_lea.vmem [#allocation2], %s472_s29  ;;  %s197_s9 = sshll.u32 %s195_s6, 4  ;;  %s198_s9 = int_to_ptr.hbm [resolvable:$true] %s197_s9 }
  0x16   : > { %s199_s8 = sshll.u32 %s186_s7, 4  ;;  %p497_p0 = pnand %p507_p13, %p769_p4  ;;  %s200_s8 = int_to_ptr.vmem [resolvable:$true] %s199_s8 }
  0x17   : > { %p478_p1 = scmp.ge.s32.totalorder %s705_s17, 1  ;;  %p228_p2 = scmp.lt.s32.totalorder %s705_s17, 3 }
  0x18   : > { %s183_s10 = scalar_lea.sflag [#allocation3], %s182_s28  ;;  %s219_s19 = scalar_lea.hbm %s865_s1, %s487_s30 }
  0x19   : > { %499 = dma.hbm_to_vmem [thread:$0]  (!%p497_p0), %s198_s9, 128, %s200_s8, %s183_s10  }
  0x1a   : > { %p229_p3 = pnand %p478_p1, %p228_p2  ;;  %s210_s21 = scalar_lea.vmem [#allocation5], %s472_s29 }
  0x1b   : > { %s223_s23 = sshll.u32 %s210_s21, 4  ;;  %s221_s4 = sshll.u32 %s219_s19, 4  ;;  %s224_s23 = int_to_ptr.vmem [resolvable:$true] %s223_s23  ;;  %s222_s4 = int_to_ptr.hbm [resolvable:$true] %s221_s4 }
  0x1c   : > { %s207_s5 = scalar_lea.sflag [#allocation6], %s182_s28  ;;  %232 = sbr.rel (%p229_p3) target bundleno = 163 (0xa3), region = 32 }
  0x1d   : > { %502 = dma.hbm_to_vmem [thread:$0]  (!%p497_p0), %s222_s4, 128, %s224_s23, %s207_s5  }
  0x1e   : > { %s805_s22 = sand.u32 (!%p229_p3), 1, %s689_s13  }
  0x1f   : > { %s808_s6 = sshll.u32 (!%p229_p3), %s805_s22, 3  ;;  %s235_s7 = scalar_lea.sflag (!%p229_p3), [#allocation3], %s805_s22 }
  0x20   : > { %s238_s8 = scalar_lea.vmem (!%p229_p3), [#allocation2], %s808_s6 }
  0x21   : > { %672 = dma.done.wait (%p775_p8), %s235_s7, 128  }
  0x22   : > { %674 = vsyncadd (%p775_p8), %s235_s7, 4294967168  ;;  %s245_s28 = scalar_lea.sflag [#allocation6], %s805_s22  ;;  %s248_s29 = scalar_lea.vmem [#allocation5], %s808_s6 }
  0x23   : > { %676 = dma.done.wait (%p775_p8), %s245_s28, 128  }
  0x24   : > { %678 = vsyncadd (%p775_p8), %s245_s28, 4294967168  ;;  %v707_v0 = vmov 0   ;;  %v289_v1 = vld [vmem:[%s248_s29] sm:$0xff]  ;;  %s489_s10 = sshll.u32 %s697_s15, 3  ;;  %vm307_vm0 = vcmask 1043456   ;;  %v288_v7 = vld [vmem:[%s238_s8] sm:$0xff] }
  0x25   : > { %558 = vset.pattern.permute.xlu0 %v707_v0  ;;  %v290_v2 = vld [vmem:[%s866_s2] sm:$0xf]  ;;  %297 = vst [vmem:[#allocation1] ss:$2 sm:$0xff] %v289_v1  ;;  %s328_s24 = scalar_lea.hbm %s867_s3, %s489_s10  ;;  %s280_s19 = scalar_lea.vmem [#allocation7], %s808_s6 }
  0x26   : > { %293 = vperm.xlu0 %558, %v290_v2   ;;  %s330_s21 = sshll.u32 %s280_s19, 4  ;;  %s332_s23 = sshll.u32 %s328_s24, 4  ;;  %s331_s21 = int_to_ptr.vmem [resolvable:$true] %s330_s21  ;;  %s333_s23 = int_to_ptr.hbm [resolvable:$true] %s332_s23 }
  0x27   : > { %s313_s15 = scalar_lea.sflag [#allocation4], %s805_s22  ;;  %s633_s4 = sshra.s32 %s333_s23, 4  ;;  %s634_s4 = int_to_ptr.hbm [resolvable:$true] %s633_s4 }
  0x28   : > { %s635_s5 = scalar_lea.hbm %s634_s4, 8  ;;  %s639_s28 = scalar_lea.hbm %s867_s3, 16 }
  0x29   : > { %p636_p4 = scmp.ne.s32.totalorder %s634_s4, %s635_s5  ;;  %p640_p7 = scmp.lt.s32.totalorder %s634_s4, %s867_s3 }
  0x2a   : > { %p641_p8 = scmp.lt.s32.totalorder %s639_s28, %s635_s5 }
  0x2b   : > { %p637_p5 = pnand %p636_p4, %p779_p9 }
  0x2c   : > { %v299_v3 = vld.sshfl [vmem:[#allocation1 + $0x8] sm:$0xff pattern:$0x75316420]  ;;  %v298_v5 = vld.sshfl [vmem:[#allocation1] sm:$0xff pattern:$0x75316420]  ;;  %p642_p10 = por %p641_p8, %p640_p7 }
  0x2d   : > { %p638_p6 = pneg %p637_p5 }
  0x2f   : > { %p643_p13 = pnand %p642_p10, %p638_p6 }
  0x98   : > { %v294_v4 = vpop.permute.xlu0 %293 }
  0x99   : > { %v303_v6 = vmul.f32 %v299_v3, %v294_v4  ;;  %v302_v8 = vmul.f32 %v298_v5, %v294_v4 }
  0x9b   : > { %v306_v9 = vrot.slane %v303_v6, 4 }
  0x9d   : > { %v308_v10 = vsel %vm307_vm0, %v302_v8, %v306_v9 }
  0x9e   : > { %v310_v11 = vadd.f32 %v308_v10, %v288_v7 }
  0xa0   : > { %311 = vst [vmem:[%s280_s19] sm:$0xff] %v310_v11 }
  0xa1   : > { %646 = shalt.err (!%p643_p13)
}
  0xa2   : > { %494 = dma.vmem_to_hbm [thread:$0]  (%p779_p9), %s331_s21, 128, %s333_s23, %s313_s15  }
  0xa3 PF: > { %s344_s22 = sand.u32 1, %s685_s12   ;;  %p504_p0 = pnand %p471_p12, %p786_p11 }
  0xa4   : > { %s345_s30 = scalar_lea.sflag [#allocation4], %s344_s22 }
  0xa5   : > { %p505_p1 = pneg %p504_p0 }
  0xa7   : > { %680 = dma.done.wait (%p505_p1), %s345_s30, 128  }
  0xa8   : > { %682 = vsyncadd (%p505_p1), %s345_s30, 4294967168  ;;  %s22_s17 = sadd.s32 1, %s705_s17   ;;  %s872_s12 = smov %s689_s13 }
  0xa9   : > { %p19_p2 = scmp.ge.s32.totalorder %s22_s17, 4   ;;  %s873_s13 = smov %s693_s14 }
  0xaa   : > { %s874_s14 = smov %s784_s26  ;;  %s875_s15 = smov %s701_s16 }
  0xab   : > { %s876_s16 = smov %s878_s20  ;;  %21 = sbr.rel (!%p19_p2) target bundleno = 8 (0x8), region = 93 }
  0xb0   :  { %351 = vsyncpa [#allocation3], 1 }
  0xb1   :  { %353 = vsyncpa [#allocation3 + $0x1], 1 }
  0xb2   :  { %354 = vsyncpa [#allocation6], 1 }
  0xb3   :  { %356 = vsyncpa [#allocation6 + $0x1], 1 }
  0xb4   :  { %357 = vsyncpa [#allocation4], 1 }
  0xb5   :  { %359 = vsyncpa [#allocation4 + $0x1], 1 }

</bundles_post_ra>
